<compile_context>
chip_gen: v7x
topology: tpu7x:2x2x1
jax: 0.10.0
libtpu: 0.0.40
codegen_flags: <defaults>
</compile_context>

<pallas_src>
import functools

import jax
import jax.numpy as jnp
from jax.experimental import pallas as pl
from jax.experimental.pallas import tpu as pltpu

_LANES = 128


def _residual_tcn_kernel(d, x_ref, w_ref, bias_ref, out_ref):
    # x_ref   : (bb, T, C)   native channel count (lane-masked load, no HBM pad)
    # w_ref   : (4, Cp, Cp)  [w1 tap0, w1 tap1, w2 tap0, w2 tap1], BN scale folded
    # bias_ref: (2, Cp)      row 0 = folded bias1, row 1 = folded bias2
    # out_ref : (bb, L2, C)  only the real channels are written back
    bb, T, C = x_ref.shape
    Cp = w_ref.shape[-1]
    L2 = out_ref.shape[1]
    rows = bb * T

    # Load once, cast to f32, lane-pad C -> Cp in-register (one block-sized copy
    # that replaces a wrapper-side HBM pad of a 3.7x-inflated array).
    x = x_ref[...].astype(jnp.float32)
    x = jnp.concatenate(
        [x, jnp.zeros((bb, T, Cp - C), jnp.float32)], axis=-1).reshape(rows, Cp)

    b1 = bias_ref[0:1, :]
    b2 = bias_ref[1:2, :]

    # ---- conv1 (+ folded BN1) + ReLU: two accumulated dots on the full-T slab ----
    # Dilated tap x[t + d] via a sublane roll (XLU) instead of a misaligned slice.
    # Rows that wrap across a batch boundary sit at t >= T - d and are discarded.
    x_s = pltpu.roll(x, shift=rows - d, axis=0)                # x[t + d]
    h = jnp.dot(x, w_ref[0], preferred_element_type=jnp.float32)
    h = h + jnp.dot(x_s, w_ref[1], preferred_element_type=jnp.float32)
    h = jnp.maximum(h + b1, 0.0)

    # ---- conv2 (+ folded BN2) ----
    h_s = pltpu.roll(h, shift=rows - d, axis=0)                # h[t + d]
    g = jnp.dot(h, w_ref[2], preferred_element_type=jnp.float32)
    g = g + jnp.dot(h_s, w_ref[3], preferred_element_type=jnp.float32)
    g = g + b2

    # ---- residual on the trimmed input tail x[t + 2d] + ReLU ----
    x_r = pltpu.roll(x, shift=rows - 2 * d, axis=0)            # x[t + 2d]
    y = jnp.maximum(g + x_r, 0.0)

    # Single row/lane compaction at the store: keep t in [0, L2) of each batch
    # slab and only the real C channels (start-0 slices, no relayout).
    out_ref[...] = y.reshape(bb, T, Cp)[:, :L2, :C].astype(out_ref.dtype)


def _device_kind():
    try:
        return jax.devices()[0].device_kind.lower()
    except Exception:
        return ""


def residual_tcn_forward(x, params, *, d, batch_block=None):
    """x: (B, T, C) float32.  Returns (B, T - 2*d, C)."""
    B, T, C = x.shape
    L2 = T - 2 * d
    assert L2 > 0, "sequence too short for two dilated convs"
    eps = 1e-5
    Cp = ((C + _LANES - 1) // _LANES) * _LANES

    # ---- fold eval-mode BatchNorm into per-output-channel scale/shift ----
    s1 = params['bn1_gamma'] / jnp.sqrt(params['bn1_var'] + eps)
    t1 = params['bn1_beta'] - params['bn1_mean'] * s1
    s2 = params['bn2_gamma'] / jnp.sqrt(params['bn2_var'] + eps)
    t2 = params['bn2_beta'] - params['bn2_mean'] * s2

    # Conv1d weight (C_out, C_in, 2): per-tap (C_in, C_out) matmul operands with
    # the BN scale folded into the output columns, zero-padded to (Cp, Cp).
    def fold_tap(w, s, tap):
        wt = jnp.transpose(w[:, :, tap]) * s[None, :]          # (C_in, C_out)
        return jnp.pad(wt, ((0, Cp - C), (0, Cp - C)))

    w_stack = jnp.stack(
        [fold_tap(params['w1'], s1, 0), fold_tap(params['w1'], s1, 1),
         fold_tap(params['w2'], s2, 0), fold_tap(params['w2'], s2, 1)],
        axis=0).astype(jnp.float32)                            # (4, Cp, Cp)

    bias1 = params['b1'] * s1 + t1
    bias2 = params['b2'] * s2 + t2
    biases = jnp.stack([jnp.pad(bias1, (0, Cp - C)),
                        jnp.pad(bias2, (0, Cp - C))], axis=0).astype(jnp.float32)

    # ---- per-generation VMEM / grid policy ----
    kind = _device_kind()
    if "v7" in kind:
        vmem_limit = 48 << 20          # 64 MiB physical on v7x, leave headroom
        force_multi = True             # 2 TensorCores: want nb >= 2
    elif "v5" in kind or "v6" in kind:
        vmem_limit = 96 << 20          # 128 MiB physical; default scoped 16/32 MiB
        force_multi = False            # single TC: fewest grid steps wins
    else:
        vmem_limit = 64 << 20
        force_multi = False

    if batch_block is None:
        budget = int(vmem_limit * 0.6)          # headroom for weights / pipeline

        def footprint(bb):                      # bytes of VMEM this block needs
            return (2 * bb * T * C * 4          # double-buffered input block
                    + 2 * bb * L2 * C * 4       # double-buffered output block
                    + 8 * bb * T * Cp * 4)      # in-kernel f32 temporaries

        max_bb = B // 2 if (force_multi and B >= 2) else B     # nb >= 2 on v7x
        cands = [bb for bb in range(max_bb, 0, -1) if B % bb == 0]
        # Prefer blocks whose matmul M (= bb*T rows) is sublane-aligned.
        batch_block = next((bb for bb in cands
                            if footprint(bb) <= budget and (bb * T) % 8 == 0), None)
        if batch_block is None:
            batch_block = next((bb for bb in cands if footprint(bb) <= budget), 1)
    assert B % batch_block == 0
    nb = B // batch_block

    x = x.astype(jnp.float32)
    kernel = functools.partial(_residual_tcn_kernel, d)

    out = pl.pallas_call(
        kernel,
        out_shape=jax.ShapeDtypeStruct((B, L2, C), x.dtype),
        grid=(nb,),
        in_specs=[
            pl.BlockSpec((batch_block, T, C), lambda b: (b, 0, 0)),   # x (native C)
            pl.BlockSpec((4, Cp, Cp), lambda b: (0, 0, 0)),           # folded weights
            pl.BlockSpec((2, Cp), lambda b: (0, 0)),                  # folded biases
        ],
        out_specs=pl.BlockSpec((batch_block, L2, C), lambda b: (b, 0, 0)),
        compiler_params=pltpu.CompilerParams(
            dimension_semantics=("parallel",),
            vmem_limit_bytes=vmem_limit),
    )(x, w_stack, biases)

    return out


def _reference_forward(x, params, *, d):
    """Pure-JAX reference mirroring the PyTorch math (eval-mode BN)."""
    eps = 1e-5
    B, T, C = x.shape

    def conv(inp, w, b):
        L = inp.shape[1] - d
        return (jnp.einsum('btc,oc->bto', inp[:, :L, :], w[:, :, 0])
                + jnp.einsum('btc,oc->bto', inp[:, d:d + L, :], w[:, :, 1])
                + b[None, None, :])

    def bn(h, g, bta, m, v):
        return (h - m[None, None, :]) / jnp.sqrt(v[None, None, :] + eps) \
               * g[None, None, :] + bta[None, None, :]

    h = jax.nn.relu(bn(conv(x, params['w1'], params['b1']),
                       params['bn1_gamma'], params['bn1_beta'],
                       params['bn1_mean'], params['bn1_var']))
    g = bn(conv(h, params['w2'], params['b2']),
           params['bn2_gamma'], params['bn2_beta'],
           params['bn2_mean'], params['bn2_var'])
    L2 = g.shape[1]
    return jax.nn.relu(g + x[:, T - L2:, :])


if __name__ == "__main__":
    B, T, C, d = 2, 16, 35, 2          # n_residue=35, k=2, dilation=d
    key = jax.random.PRNGKey(0)
    kx, kw1, kb1, kw2, kb2 = jax.random.split(key, 5)

    x = jax.random.normal(kx, (B, T, C), dtype=jnp.float32)

    params = dict(
        w1=0.1 * jax.random.normal(kw1, (C, C, 2), dtype=jnp.float32),
        b1=0.1 * jax.random.normal(kb1, (C,), dtype=jnp.float32),
        w2=0.1 * jax.random.normal(kw2, (C, C, 2), dtype=jnp.float32),
        b2=0.1 * jax.random.normal(kb2, (C,), dtype=jnp.float32),
        bn1_gamma=jnp.ones((C,), jnp.float32),
        bn1_beta=jnp.zeros((C,), jnp.float32),
        bn1_mean=jnp.zeros((C,), jnp.float32),
        bn1_var=jnp.ones((C,), jnp.float32),
        bn2_gamma=jnp.ones((C,), jnp.float32),
        bn2_beta=jnp.zeros((C,), jnp.float32),
        bn2_mean=jnp.zeros((C,), jnp.float32),
        bn2_var=jnp.ones((C,), jnp.float32),
    )

    out = residual_tcn_forward(x, params, d=d)
    out = jax.block_until_ready(out)

    ref = _reference_forward(x, params, d=d)
    assert out.shape == (B, T - 2 * d, C), out.shape
    assert jnp.allclose(out, ref, atol=1e-4, rtol=1e-4), "mismatch vs reference"

    print("KERNEL_OK")
</pallas_src>

<mosaic_0001>
module attributes {stable_mosaic.version = 11 : i64} {
  func.func @_residual_tcn_kernel(%arg0: i32, %arg1: memref<2x16x35xf32, #tpu.memory_space<vmem>>, %arg2: memref<4x128x128xf32, #tpu.memory_space<vmem>>, %arg3: memref<2x128xf32, #tpu.memory_space<vmem>>, %arg4: memref<2x12x35xf32, #tpu.memory_space<vmem>>) attributes {dimension_semantics = [#tpu.dimension_semantics<parallel>], iteration_bounds = array<i64: 1>, scalar_prefetch = 0 : i64, scratch_operands = 0 : i64, tpu.core_type = #tpu.core_type<tc>, window_params = [{transform_indices = @transform_0, window_bounds = array<i64: 2, 16, 35>}, {pipeline_mode = #tpu.pipeline_mode<synchronous>, transform_indices = @transform_1, window_bounds = array<i64: 4, 128, 128>}, {pipeline_mode = #tpu.pipeline_mode<synchronous>, transform_indices = @transform_2, window_bounds = array<i64: 2, 128>}, {transform_indices = @transform_3, window_bounds = array<i64: 2, 12, 35>}]} {
    %c0 = arith.constant 0 : index
    %c0_0 = arith.constant 0 : index
    %c0_1 = arith.constant 0 : index
    %0 = vector.load %arg1[%c0, %c0_0, %c0_1] : memref<2x16x35xf32, #tpu.memory_space<vmem>>, vector<2x16x35xf32>
    %cst = arith.constant 0.000000e+00 : f32
    %1 = vector.broadcast %cst : f32 to vector<2x16x93xf32>
    %2 = tpu.concatenate %0, %1 in 2 : vector<2x16x35xf32>, vector<2x16x93xf32> -> vector<2x16x128xf32>
    %3 = vector.shape_cast %2 : vector<2x16x128xf32> to vector<32x128xf32>
    %c0_2 = arith.constant 0 : index
    %c0_3 = arith.constant 0 : index
    %4 = vector.load %arg3[%c0_2, %c0_3] : memref<2x128xf32, #tpu.memory_space<vmem>>, vector<1x128xf32>
    %c1 = arith.constant 1 : index
    %c0_4 = arith.constant 0 : index
    %5 = vector.load %arg3[%c1, %c0_4] : memref<2x128xf32, #tpu.memory_space<vmem>>, vector<1x128xf32>
    %c30_i32 = arith.constant 30 : i32
    %6 = tpu.dynamic_rotate %3 by %c30_i32 dim 0 : vector<32x128xf32>, i32 -> vector<32x128xf32>
    %c0_5 = arith.constant 0 : index
    %c0_6 = arith.constant 0 : index
    %c0_7 = arith.constant 0 : index
    %7 = vector.load %arg2[%c0_5, %c0_6, %c0_7] : memref<4x128x128xf32, #tpu.memory_space<vmem>>, vector<1x128x128xf32>
    %8 = vector.shape_cast %7 : vector<1x128x128xf32> to vector<128x128xf32>
    %cst_8 = arith.constant dense<0.000000e+00> : vector<32x128xf32>
    %9 = tpu.matmul %3, %8, %cst_8 {dimension_numbers = #tpu.dot_dimension_numbers<[1], [0], [0], [1], [0, 0, 1, 1], [], []>} : vector<32x128xf32>, vector<128x128xf32>, vector<32x128xf32> -> vector<32x128xf32>
    %c1_9 = arith.constant 1 : index
    %c0_10 = arith.constant 0 : index
    %c0_11 = arith.constant 0 : index
    %10 = vector.load %arg2[%c1_9, %c0_10, %c0_11] : memref<4x128x128xf32, #tpu.memory_space<vmem>>, vector<1x128x128xf32>
    %11 = vector.shape_cast %10 : vector<1x128x128xf32> to vector<128x128xf32>
    %cst_12 = arith.constant dense<0.000000e+00> : vector<32x128xf32>
    %12 = tpu.matmul %6, %11, %cst_12 {dimension_numbers = #tpu.dot_dimension_numbers<[1], [0], [0], [1], [0, 0, 1, 1], [], []>} : vector<32x128xf32>, vector<128x128xf32>, vector<32x128xf32> -> vector<32x128xf32>
    %13 = arith.addf %9, %12 : vector<32x128xf32>
    %14 = vector.broadcast %4 : vector<1x128xf32> to vector<32x128xf32>
    %15 = arith.addf %13, %14 : vector<32x128xf32>
    %cst_13 = arith.constant 0.000000e+00 : f32
    %16 = vector.broadcast %cst_13 : f32 to vector<32x128xf32>
    %17 = arith.maximumf %15, %16 : vector<32x128xf32>
    %c30_i32_14 = arith.constant 30 : i32
    %18 = tpu.dynamic_rotate %17 by %c30_i32_14 dim 0 : vector<32x128xf32>, i32 -> vector<32x128xf32>
    %c2 = arith.constant 2 : index
    %c0_15 = arith.constant 0 : index
    %c0_16 = arith.constant 0 : index
    %19 = vector.load %arg2[%c2, %c0_15, %c0_16] : memref<4x128x128xf32, #tpu.memory_space<vmem>>, vector<1x128x128xf32>
    %20 = vector.shape_cast %19 : vector<1x128x128xf32> to vector<128x128xf32>
    %cst_17 = arith.constant dense<0.000000e+00> : vector<32x128xf32>
    %21 = tpu.matmul %17, %20, %cst_17 {dimension_numbers = #tpu.dot_dimension_numbers<[1], [0], [0], [1], [0, 0, 1, 1], [], []>} : vector<32x128xf32>, vector<128x128xf32>, vector<32x128xf32> -> vector<32x128xf32>
    %c3 = arith.constant 3 : index
    %c0_18 = arith.constant 0 : index
    %c0_19 = arith.constant 0 : index
    %22 = vector.load %arg2[%c3, %c0_18, %c0_19] : memref<4x128x128xf32, #tpu.memory_space<vmem>>, vector<1x128x128xf32>
    %23 = vector.shape_cast %22 : vector<1x128x128xf32> to vector<128x128xf32>
    %cst_20 = arith.constant dense<0.000000e+00> : vector<32x128xf32>
    %24 = tpu.matmul %18, %23, %cst_20 {dimension_numbers = #tpu.dot_dimension_numbers<[1], [0], [0], [1], [0, 0, 1, 1], [], []>} : vector<32x128xf32>, vector<128x128xf32>, vector<32x128xf32> -> vector<32x128xf32>
    %25 = arith.addf %21, %24 : vector<32x128xf32>
    %26 = vector.broadcast %5 : vector<1x128xf32> to vector<32x128xf32>
    %27 = arith.addf %25, %26 : vector<32x128xf32>
    %c28_i32 = arith.constant 28 : i32
    %28 = tpu.dynamic_rotate %3 by %c28_i32 dim 0 : vector<32x128xf32>, i32 -> vector<32x128xf32>
    %29 = arith.addf %27, %28 : vector<32x128xf32>
    %cst_21 = arith.constant 0.000000e+00 : f32
    %30 = vector.broadcast %cst_21 : f32 to vector<32x128xf32>
    %31 = arith.maximumf %29, %30 : vector<32x128xf32>
    %32 = vector.shape_cast %31 : vector<32x128xf32> to vector<2x16x128xf32>
    %33 = vector.extract_strided_slice %32 {offsets = [0, 0, 0], sizes = [2, 12, 35], strides = [1, 1, 1]} : vector<2x16x128xf32> to vector<2x12x35xf32>
    %c0_22 = arith.constant 0 : index
    %c0_23 = arith.constant 0 : index
    %c0_24 = arith.constant 0 : index
    %34 = vector.load %arg4[%c0_22, %c0_23, %c0_24] : memref<2x12x35xf32, #tpu.memory_space<vmem>>, vector<2x12x35xf32>
    tpu.vector_store %arg4[%c0_22, %c0_23, %c0_24], %33 {strides = array<i32>} : memref<2x12x35xf32, #tpu.memory_space<vmem>>, vector<2x12x35xf32>,
    return
  }
  func.func @transform_0(%arg0: i32) -> (i32, i32, i32) {
    %c0_i32 = arith.constant 0 : i32
    %c0_i32_0 = arith.constant 0 : i32
    %c0_i32_1 = arith.constant 0 : i32
    return %arg0, %c0_i32, %c0_i32_0 : i32, i32, i32
  }
  func.func @transform_1(%arg0: i32) -> (i32, i32, i32) {
    %c0_i32 = arith.constant 0 : i32
    %c0_i32_0 = arith.constant 0 : i32
    %c0_i32_1 = arith.constant 0 : i32
    %c0_i32_2 = arith.constant 0 : i32
    return %c0_i32, %c0_i32_0, %c0_i32_1 : i32, i32, i32
  }
  func.func @transform_2(%arg0: i32) -> (i32, i32) {
    %c0_i32 = arith.constant 0 : i32
    %c0_i32_0 = arith.constant 0 : i32
    %c0_i32_1 = arith.constant 0 : i32
    return %c0_i32, %c0_i32_0 : i32, i32
  }
  func.func @transform_3(%arg0: i32) -> (i32, i32, i32) {
    %c0_i32 = arith.constant 0 : i32
    %c0_i32_0 = arith.constant 0 : i32
    %c0_i32_1 = arith.constant 0 : i32
    return %arg0, %c0_i32, %c0_i32_0 : i32, i32, i32
  }
}

</mosaic_0001>

<bundles_post_ra>
// kernel: tpu_custom_call.1
= control target key start
LH: loop header
LB: loop body
LE: loop exit
PB: predicated region body
PF: predicated region fallthrough
CT: control target
= control target key end

     0   :  { %8 = vsyncpa [#allocation3], 0  ;;  %s1195_s0 = inlined_call_operand.hbm [shape: f32[2,16,35], index: 0, kind: input, shape index: {}]   ;;  %s1196_s1 = inlined_call_operand.hbm [shape: f32[4,128,128], index: 1, kind: input, shape index: {}]   ;;  %s1197_s2 = inlined_call_operand.hbm [shape: f32[2,128], index: 2, kind: input, shape index: {}]   ;;  %s1198_s3 = inlined_call_operand.hbm [shape: f32[2,12,35], index: 3, kind: output, shape index: {}]  }
   0x1   :  { %9 = vsyncpa [#allocation6], 0 }
   0x2   :  { %10 = vsyncpa [#allocation4], 0  ;;  %s1025_s12 = smov [#allocation5]   ;;  %s1026_s14 = smov [#allocation2]  }
   0x3   :  { %s28_s13 = sshll.u32 %s1025_s12, 4  ;;  %s16_s15 = sshll.u32 %s1026_s14, 4  ;;  %s29_s13 = int_to_ptr.vmem [resolvable:$true] %s28_s13  ;;  %s1051_s15 = int_to_ptr.vmem [resolvable:$true] %s16_s15 }
   0x4   :  { %s931_s18 = scalar_lea.hbm %s1196_s1, 8192 }
   0x5   :  { %p932_p0 = scmp.ne.s32.totalorder %s1196_s1, %s931_s18  ;;  %p935_p1 = scmp.lt.u32.totalorder %s931_s18, %s1196_s1 }
   0x7   :  { %p937_p2 = pnand %p935_p1, %p932_p0 }
   0x9   :  { %940 = shalt.err (!%p937_p2)
}
   0xa   :  { %s941_s23 = scalar_lea.vmem %s29_s13, 8192  ;;  %p946_p4 = scmp.lt.s32.totalorder %s29_s13, %s29_s13 }
   0xb   :  { %p942_p3 = scmp.ne.s32.totalorder %s29_s13, %s941_s23  ;;  %p947_p5 = scmp.lt.s32.totalorder %s941_s23, %s941_s23 }
   0xd   :  { %p948_p6 = por %p947_p5, %p946_p4 }
   0xf   :  { %p949_p7 = pnand %p948_p6, %p942_p3 }
  0x11   :  { %952 = shalt.err (!%p949_p7)
}
  0x12   :  { %s1027_s24 = smov 128   ;;  %s1028_s25 = smov 8  }
  0x13   :  { %34 = dma.hbm_to_vmem [thread:$0]  %s1196_s1, 8192, %s29_s13, [#allocation6], %s1027_s24, %s1027_s24, %s1028_s25  }
  0x14   :  { %s953_s30 = scalar_lea.hbm %s1195_s0, 512 }
  0x15   :  { %p954_p8 = scmp.ne.s32.totalorder %s1195_s0, %s953_s30  ;;  %p957_p9 = scmp.lt.u32.totalorder %s953_s30, %s1195_s0 }
  0x17   :  { %p959_p10 = pnand %p957_p9, %p954_p8 }
  0x19   :  { %962 = shalt.err (!%p959_p10)
}
  0x1a   :  { %s963_s8 = scalar_lea.vmem %s1051_s15, 512  ;;  %p968_p12 = scmp.lt.s32.totalorder %s1051_s15, %s1051_s15 }
  0x1b   :  { %p964_p11 = scmp.ne.s32.totalorder %s1051_s15, %s963_s8  ;;  %p969_p13 = scmp.lt.s32.totalorder %s963_s8, %s963_s8 }
  0x1d   :  { %p970_p0 = por %p969_p13, %p968_p12 }
  0x1f   :  { %p971_p1 = pnand %p970_p0, %p964_p11 }
  0x21   :  { %974 = shalt.err (!%p971_p1)
}
  0x22   :  { %22 = dma.hbm_to_vmem [thread:$0]  %s1195_s0, 512, %s1051_s15, [#allocation3], %s1027_s24, %s1027_s24, %s1028_s25  }
  0x23   :  { %s1029_s10 = smov [#allocation7]   ;;  %s975_s14 = scalar_lea.hbm %s1197_s2, 32 }
  0x24   :  { %s41_s11 = sshll.u32 %s1029_s10, 4  ;;  %p976_p2 = scmp.ne.s32.totalorder %s1197_s2, %s975_s14  ;;  %s42_s11 = int_to_ptr.vmem [resolvable:$true] %s41_s11 }
  0x25   :  { %p979_p3 = scmp.lt.u32.totalorder %s975_s14, %s1197_s2 }
  0x27   :  { %p981_p4 = pnand %p979_p3, %p976_p2 }
  0x29   :  { %984 = shalt.err (!%p981_p4)
}
  0x2a   :  { %s985_s20 = scalar_lea.vmem %s42_s11, 32  ;;  %p990_p6 = scmp.lt.s32.totalorder %s42_s11, %s42_s11 }
  0x2b   :  { %p986_p5 = scmp.ne.s32.totalorder %s42_s11, %s985_s20  ;;  %p991_p7 = scmp.lt.s32.totalorder %s985_s20, %s985_s20 }
  0x2d   :  { %p992_p8 = por %p991_p7, %p990_p6 }
  0x2f   :  { %p993_p9 = pnand %p992_p8, %p986_p5 }
  0x31   :  { %996 = shalt.err (!%p993_p9)
}
  0x32   :  { %44 = dma.hbm_to_vmem [thread:$0]  %s1197_s2, 32, %s42_s11, [#allocation6]  }
  0x33   :  { %1019 = dma.done.wait [#allocation3], 512  }
  0x34   :  { %1020 = vsyncadd [#allocation3], 4294966784 }
  0x35   :  { %1021 = dma.done.wait [#allocation6], 8224  }
  0x36   :  { %1022 = vsyncadd [#allocation6], 4294959072  ;;  %v69_v0 = vlaneseq  ;;  %v93_v1 = vld [vmem:[#allocation5 + $0x80] sm:$0xff]  ;;  %v94_v2 = vld [vmem:[#allocation5 + $0x88] sm:$0xff]  ;;  %vm58_vm0 = vcmask 285696   ;;  %vm529_vm3 = vcmask 281600  }
  0x37   :  { %v95_v3 = vld [vmem:[#allocation5 + $0x90] sm:$0xff]  ;;  %v789_v4 = vpack.c.bf16 %v94_v2, %v93_v1  ;;  %v96_v5 = vld [vmem:[#allocation5 + $0x98] sm:$0xff]  ;;  %v97_v7 = vld [vmem:[#allocation5 + $0xa0] sm:$0xff]  ;;  %s1030_s2 = smov [#allocation8]  }
  0x38   :  { %v793_v6 = vpack.c.bf16 %v96_v5, %v95_v3  ;;  %v98_v8 = vld [vmem:[#allocation5 + $0xa8] sm:$0xff]  ;;  %v1100_v9 = vshrl.u32 %v69_v0, 7  ;;  %v1102_v11 = vld [vmem:[#allocation2] sm:$0xff]  ;;  %v99_v13 = vld [vmem:[#allocation5 + $0xb0] sm:$0xff]  ;;  %s538_s21 = sshll.u32 %s1030_s2, 4  ;;  %s539_s21 = int_to_ptr.vmem [resolvable:$true] %s538_s21 }
  0x39   :  { %790 = vmatprep.subr.bf16.mxu0 %v789_v4  ;;  %v797_v10 = vpack.c.bf16 %v98_v8, %v97_v7  ;;  %v1104_v12 = vld [vmem:[#allocation2 + $0x8] sm:$0xff]  ;;  %v100_v14 = vld [vmem:[#allocation5 + $0xb8] sm:$0xff]  ;;  %v1108_v15 = vsel %vm58_vm0, %v1102_v11, 0.0  ;;  %v101_v21 = vld [vmem:[#allocation5 + $0xc0] sm:$0xff]  ;;  %s997_s22 = scalar_lea.vmem %s539_s21, 512  ;;  %p1002_p11 = scmp.lt.s32.totalorder %s539_s21, %s539_s21 }
  0x3a   :  { %792 = vmatpush3.bf16.msra.mxu0 %v789_v4  ;;  %v1112_v16 = vsel %vm58_vm0, %v1104_v12, 0.0  ;;  %vm71_vm1 = vcmp.lt.s32.totalorder %v1100_v9, 6  ;;  %v65_v17 = vrot.slane %v1108_v15, 2  ;;  %v801_v19 = vpack.c.bf16 %v100_v14, %v99_v13  ;;  %v102_v22 = vld [vmem:[#allocation5 + $0xc8] sm:$0xff]  ;;  %v317_v23 = vld [vmem:[#allocation5 + $0x180] sm:$0xff]  ;;  %v103_v26 = vld [vmem:[#allocation5 + $0xd0] sm:$0xff]  ;;  %p998_p10 = scmp.ne.s32.totalorder %s539_s21, %s997_s22  ;;  %p1003_p12 = scmp.lt.s32.totalorder %s997_s22, %s997_s22 }
  0x3b   :  { %794 = vmatprep.subr.bf16.mxu0 %v793_v6  ;;  %v66_v18 = vrot.slane %v1112_v16, 2  ;;  %v318_v24 = vld [vmem:[#allocation5 + $0x188] sm:$0xff]  ;;  %v805_v25 = vpack.c.bf16 %v102_v22, %v101_v21  ;;  %v319_v28 = vld [vmem:[#allocation5 + $0x190] sm:$0xff]  ;;  %v320_v29 = vld [vmem:[#allocation5 + $0x198] sm:$0xff]  ;;  %vm515_vm2 = vcmp.lt.s32.totalorder %v1100_v9, 4 }
  0x3c   :  { %v853_v27 = vpack.c.bf16 %v318_v24, %v317_v23  ;;  %v104_v30 = vld [vmem:[#allocation5 + $0xd8] sm:$0xff]  ;;  %v857_v31 = vpack.c.bf16 %v320_v29, %v319_v28  ;;  %v321_v32 = vld [vmem:[#allocation5 + $0x1a0] sm:$0xff]  ;;  %v322_v33 = vld [vmem:[#allocation5 + $0x1a8] sm:$0xff]  ;;  %p1004_p13 = por %p1003_p12, %p1002_p11 }
  0x3d   :  { %v74_v20 = vsel %vm71_vm1, %v65_v17, %v66_v18  ;;  %v809_v34 = vpack.c.bf16 %v104_v30, %v103_v26  ;;  %v105_v35 = vld [vmem:[#allocation5 + $0xe0] sm:$0xff]  ;;  %v861_v36 = vpack.c.bf16 %v322_v33, %v321_v32  ;;  %v106_v37 = vld [vmem:[#allocation5 + $0xe8] sm:$0xff]  ;;  %v323_v38 = vld [vmem:[#allocation5 + $0x1b0] sm:$0xff] }
  0x3e   :  { %796 = vmatpush3.bf16.msra.mxu0 %v793_v6  ;;  %669 = vmatprep.mubr.f32.mxu0 %v74_v20  ;;  %v324_v39 = vld [vmem:[#allocation5 + $0x1b8] sm:$0xff]  ;;  %v813_v40 = vpack.c.bf16 %v106_v37, %v105_v35  ;;  %v107_v41 = vld [vmem:[#allocation5 + $0xf0] sm:$0xff]  ;;  %v325_v45 = vld [vmem:[#allocation5 + $0x1c0] sm:$0xff]  ;;  %p1005_p0 = pnand %p1004_p13, %p998_p10 }
  0x3f   :  { %798 = vmatprep.subr.bf16.mxu0 %v797_v10  ;;  %854 = vmatprep.subr.bf16.mxu1 %v853_v27  ;;  %v108_v42 = vld [vmem:[#allocation5 + $0xf8] sm:$0xff]  ;;  %v865_v43 = vpack.c.bf16 %v324_v39, %v323_v38  ;;  %v1123_v44 = vld [vmem:[#allocation2 + $0x10] sm:$0xff]  ;;  %v326_v46 = vld [vmem:[#allocation5 + $0x1c8] sm:$0xff] }
  0x40   :  { %856 = vmatpush3.bf16.msra.mxu1 %v853_v27  ;;  %v1125_v47 = vld [vmem:[#allocation2 + $0x18] sm:$0xff]  ;;  %v817_v48 = vpack.c.bf16 %v108_v42, %v107_v41  ;;  %v1129_v49 = vsel %vm58_vm0, %v1123_v44, 0.0  ;;  %v869_v50 = vpack.c.bf16 %v326_v46, %v325_v45  ;;  %v76_v51 = vld [vmem:[#allocation5] sm:$0xff]  ;;  %v77_v52 = vld [vmem:[#allocation5 + $0x8] sm:$0xff] }
  0x41   :  { %858 = vmatprep.subr.bf16.mxu1 %v857_v31  ;;  %v1133_v53 = vsel %vm58_vm0, %v1125_v47, 0.0  ;;  %v67_v54 = vrot.slane %v1129_v49, 2  ;;  %v821_v55 = vpack.c.bf16 %v77_v52, %v76_v51  ;;  %v78_v57 = vld [vmem:[#allocation5 + $0x10] sm:$0xff]  ;;  %v79_v58 = vld [vmem:[#allocation5 + $0x18] sm:$0xff]  ;;  %v80_v62 = vld [vmem:[#allocation5 + $0x20] sm:$0xff] }
  0x42   :  { %800 = vmatpush3.bf16.msra.mxu0 %v797_v10  ;;  %v68_v56 = vrot.slane %v1133_v53, 2  ;;  %v825_v60 = vpack.c.bf16 %v79_v58, %v78_v57  ;;  %v81_v63 = vld [vmem:[#allocation5 + $0x28] sm:$0xff]  ;;  %v82_v2 = vld [vmem:[#allocation5 + $0x30] sm:$0xff]  ;;  %v83_v3 = vld [vmem:[#allocation5 + $0x38] sm:$0xff] }
  0x43   :  { %802 = vmatprep.subr.bf16.mxu0 %v801_v19  ;;  %v73_v59 = vsel %vm71_vm1, %v66_v18, %v67_v54  ;;  %v829_v1 = vpack.c.bf16 %v81_v63, %v80_v62  ;;  %v833_v4 = vpack.c.bf16 %v83_v3, %v82_v2  ;;  %v84_v5 = vld [vmem:[#allocation5 + $0x40] sm:$0xff]  ;;  %v85_v6 = vld [vmem:[#allocation5 + $0x48] sm:$0xff]  ;;  %v86_v8 = vld [vmem:[#allocation5 + $0x50] sm:$0xff] }
  0x44   :  { %860 = vmatpush3.bf16.msra.mxu1 %v857_v31  ;;  %v72_v61 = vsel %vm71_vm1, %v67_v54, %v68_v56  ;;  %v75_v0 = vsel %vm71_vm1, %v68_v56, %v65_v17  ;;  %v837_v7 = vpack.c.bf16 %v85_v6, %v84_v5  ;;  %v87_v10 = vld [vmem:[#allocation5 + $0x58] sm:$0xff]  ;;  %v88_v14 = vld [vmem:[#allocation5 + $0x60] sm:$0xff]  ;;  %v89_v17 = vld [vmem:[#allocation5 + $0x68] sm:$0xff] }
  0x45   :  { %862 = vmatprep.subr.bf16.mxu1 %v861_v36  ;;  %v841_v13 = vpack.c.bf16 %v87_v10, %v86_v8  ;;  %v845_v18 = vpack.c.bf16 %v89_v17, %v88_v14  ;;  %v91_v20 = vld [vmem:[#allocation5 + $0x78] sm:$0xff]  ;;  %v327_v21 = vld [vmem:[#allocation5 + $0x1d0] sm:$0xff]  ;;  %v329_v24 = vld [vmem:[#allocation5 + $0x1e0] sm:$0xff]  ;;  %v511_v17 = vrot.slane %v1108_v15, 4 }
  0x46   :  { %804 = vmatpush3.bf16.msra.mxu0 %v801_v19  ;;  %v90_v19 = vld [vmem:[#allocation5 + $0x70] sm:$0xff]  ;;  %v328_v22 = vld [vmem:[#allocation5 + $0x1d8] sm:$0xff]  ;;  %v301_v30 = vld [vmem:[#allocation5 + $0x108] sm:$0xff] }
  0x47   :  { %806 = vmatprep.subr.bf16.mxu0 %v805_v25  ;;  %v873_v23 = vpack.c.bf16 %v328_v22, %v327_v21  ;;  %v331_v27 = vld [vmem:[#allocation5 + $0x1f0] sm:$0xff]  ;;  %v332_v28 = vld [vmem:[#allocation5 + $0x1f8] sm:$0xff]  ;;  %v555_v32 = vld [vmem:[#allocation7] ss:$0 sm:$0xff] }
  0x48   :  { %864 = vmatpush3.bf16.msra.mxu1 %v861_v36  ;;  %v881_v29 = vpack.c.bf16 %v332_v28, %v331_v27  ;;  %v304_v58 = vld [vmem:[#allocation5 + $0x120] sm:$0xff]  ;;  %v307_v62 = vld [vmem:[#allocation5 + $0x138] sm:$0xff]  ;;  %v310_v3 = vld [vmem:[#allocation5 + $0x150] sm:$0xff] }
  0x49   :  { %866 = vmatprep.subr.bf16.mxu1 %v865_v43  ;;  %v312_v6 = vld [vmem:[#allocation5 + $0x160] sm:$0xff]  ;;  %v314_v10 = vld [vmem:[#allocation5 + $0x170] sm:$0xff] }
  0x4a   :  { %808 = vmatpush3.bf16.msra.mxu0 %v805_v25  ;;  %v330_v25 = vld [vmem:[#allocation5 + $0x1e8] sm:$0xff] }
  0x4b   :  { %810 = vmatprep.subr.bf16.mxu0 %v809_v34  ;;  %v877_v26 = vpack.c.bf16 %v330_v25, %v329_v24 }
  0x4c   :  { %868 = vmatpush3.bf16.msra.mxu1 %v865_v43 }
  0x4d   :  { %870 = vmatprep.subr.bf16.mxu1 %v869_v50 }
  0x4e   :  { %812 = vmatpush3.bf16.msra.mxu0 %v809_v34 }
  0x4f   :  { %814 = vmatprep.subr.bf16.mxu0 %v813_v40 }
  0x50   :  { %872 = vmatpush3.bf16.msra.mxu1 %v869_v50  ;;  %v303_v50 = vld [vmem:[#allocation5 + $0x118] sm:$0xff] }
  0x51   :  { %874 = vmatprep.subr.bf16.mxu1 %v873_v23 }
  0x52   :  { %816 = vmatpush3.bf16.msra.mxu0 %v813_v40 }
  0x53   :  { %818 = vmatprep.subr.bf16.mxu0 %v817_v48 }
  0x54   :  { %876 = vmatpush3.bf16.msra.mxu1 %v873_v23  ;;  %v514_v23 = vrot.slane %v1133_v53, 4 }
  0x55   :  { %878 = vmatprep.subr.bf16.mxu1 %v877_v26 }
  0x56   :  { %820 = vmatpush3.bf16.msra.mxu0 %v817_v48  ;;  %v302_v48 = vld [vmem:[#allocation5 + $0x110] sm:$0xff]  ;;  %v519_v28 = vsel %vm515_vm2, %v514_v23, %v511_v17 }
  0x57   :  { %822 = vmatprep.subr.bf16.mxu0 %v821_v55  ;;  %v889_v54 = vpack.c.bf16 %v303_v50, %v302_v48 }
  0x58   :  { %880 = vmatpush3.bf16.msra.mxu1 %v877_v26 }
  0x59   :  { %670 = vmatmul.mubr.f32.vlgmr.msra.gmra.mrb[0].mxu0 %v73_v59  ;;  %882 = vmatprep.subr.bf16.mxu1 %v881_v29  ;;  %v305_v59 = vld [vmem:[#allocation5 + $0x128] sm:$0xff] }
  0x5a   :  { %824 = vmatpush3.bf16.msra.mxu0 %v821_v55  ;;  %672 = vmatprep.mubr.f32.mxu0 %v72_v61  ;;  %v306_v61 = vld [vmem:[#allocation5 + $0x130] sm:$0xff] }
  0x5b   :  { %826 = vmatprep.subr.bf16.mxu0 %v825_v60  ;;  %v897_v63 = vpack.c.bf16 %v307_v62, %v306_v61 }
  0x5c   :  { %884 = vmatpush3.bf16.msra.mxu1 %v881_v29 }
  0x5d   :  { %673 = vmatmul.mubr.f32.gmra.mrb[2].mxu0 %v75_v0  ;;  %v308_v0 = vld [vmem:[#allocation5 + $0x140] sm:$0xff] }
  0x5e   :  { %828 = vmatpush3.bf16.msra.mxu0 %v825_v60  ;;  %707 = vmatprep.mubr.msk.f32.mxu0 %vm58_vm0, %v1102_v11  ;;  %v849_v11 = vpack.c.bf16 %v91_v20, %v90_v19  ;;  %v893_v60 = vpack.c.bf16 %v305_v59, %v304_v58  ;;  %v513_v20 = vrot.slane %v1129_v49, 4 }
  0x5f   :  { %830 = vmatprep.subr.bf16.mxu0 %v829_v1 }
  0x62   :  { %832 = vmatpush3.bf16.msra.mxu0 %v829_v1  ;;  %v309_v1 = vld [vmem:[#allocation5 + $0x148] sm:$0xff] }
  0x63   :  { %834 = vmatprep.subr.bf16.mxu0 %v833_v4  ;;  %v901_v2 = vpack.c.bf16 %v309_v1, %v308_v0 }
  0x66   :  { %836 = vmatpush3.bf16.msra.mxu0 %v833_v4  ;;  %v311_v4 = vld [vmem:[#allocation5 + $0x158] sm:$0xff] }
  0x67   :  { %838 = vmatprep.subr.bf16.mxu0 %v837_v7  ;;  %v905_v5 = vpack.c.bf16 %v311_v4, %v310_v3 }
  0x6a   :  { %840 = vmatpush3.bf16.msra.mxu0 %v837_v7  ;;  %v313_v7 = vld [vmem:[#allocation5 + $0x168] sm:$0xff] }
  0x6b   :  { %842 = vmatprep.subr.bf16.mxu0 %v841_v13  ;;  %v909_v8 = vpack.c.bf16 %v313_v7, %v312_v6 }
  0x6e   :  { %844 = vmatpush3.bf16.msra.mxu0 %v841_v13  ;;  %v315_v13 = vld [vmem:[#allocation5 + $0x178] sm:$0xff] }
  0x6f   :  { %846 = vmatprep.subr.bf16.mxu0 %v845_v18  ;;  %v913_v14 = vpack.c.bf16 %v315_v13, %v314_v10 }
  0x72   :  { %848 = vmatpush3.bf16.msra.mxu0 %v845_v18  ;;  %v512_v18 = vrot.slane %v1112_v16, 4 }
  0x73   :  { %850 = vmatprep.subr.bf16.mxu0 %v849_v11 }
  0x74   :  { %v518_v19 = vsel %vm515_vm2, %v511_v17, %v512_v18  ;;  %v517_v22 = vsel %vm515_vm2, %v512_v18, %v513_v20 }
  0x76   :  { %852 = vmatpush3.bf16.msra.mxu0 %v849_v11  ;;  %v556_v11 = vld [vmem:[#allocation7 + $0x1] ss:$0 sm:$0xff] }
  0x79   :  { %708 = vmatmul.mubr.msk.f32.vlgmr.msra.gmra.mrb[0].mxu0 %vm58_vm0, %v1104_v12  ;;  %v300_v12 = vld [vmem:[#allocation5 + $0x100] sm:$0xff] }
  0x7a   :  { %710 = vmatprep.mubr.msk.f32.mxu0 %vm58_vm0, %v1123_v44  ;;  %v885_v31 = vpack.c.bf16 %v301_v30, %v300_v12  ;;  %v516_v30 = vsel %vm515_vm2, %v513_v20, %v514_v23 }
  0x7c   :  { %886 = vmatprep.subr.bf16.mxu1 %v885_v31 }
  0x7d   :  { %711 = vmatmul.mubr.msk.f32.gmra.mrb[2].mxu0 %vm58_vm0, %v1125_v47 }
 0x14c   :  { %v709_v33 = vpop.f32.mrb[0].mxu0 }
 0x14d   :  { %v284_v34 = vadd.f32 %v709_v33, %v555_v32  ;;  %v260_v35 = vpop.f32.mrb[1].mxu0 }
 0x14e   :  { %v283_v36 = vadd.f32 %v555_v32, %v260_v35 }
 0x14f   :  { %v288_v37 = vmax.f32 %v284_v34, 0.0 }
 0x150   :  { %v287_v38 = vmax.f32 %v283_v36, 0.0  ;;  %v712_v39 = vpop.f32.mrb[2].mxu0 }
 0x151   :  { %v292_v40 = vrot.slane %v288_v37, 2  ;;  %v286_v41 = vadd.f32 %v712_v39, %v555_v32  ;;  %v270_v42 = vpop.f32.mrb[3].mxu0 }
 0x152   :  { %v291_v43 = vrot.slane %v287_v38, 2  ;;  %v285_v44 = vadd.f32 %v555_v32, %v270_v42 }
 0x153   :  { %v290_v45 = vmax.f32 %v286_v41, 0.0 }
 0x154   :  { %v289_v46 = vmax.f32 %v285_v44, 0.0  ;;  %v297_v47 = vsel %vm71_vm1, %v291_v43, %v292_v40 }
 0x155   :  { %v294_v51 = vrot.slane %v290_v45, 2  ;;  %745 = vmatprep.mubr.f32.mxu1 %v297_v47 }
 0x156   :  { %v293_v52 = vrot.slane %v289_v46, 2 }
 0x157   :  { %v298_v55 = vsel %vm71_vm1, %v294_v51, %v291_v43 }
 0x158   :  { %v296_v56 = vsel %vm71_vm1, %v292_v40, %v293_v52  ;;  %v295_v57 = vsel %vm71_vm1, %v293_v52, %v294_v51 }
 0x159   :  { %746 = vmatmul.mubr.f32.vlgmr.msra.gmra.mrb[0].mxu1 %v296_v56 }
 0x15a   :  { %888 = vmatpush3.bf16.msra.mxu1 %v885_v31  ;;  %748 = vmatprep.mubr.f32.mxu1 %v295_v57 }
 0x15b   :  { %890 = vmatprep.subr.bf16.mxu1 %v889_v54 }
 0x15d   :  { %749 = vmatmul.mubr.f32.gmra.mrb[2].mxu1 %v298_v55 }
 0x15e   :  { %892 = vmatpush3.bf16.msra.mxu1 %v889_v54  ;;  %783 = vmatprep.mubr.f32.mxu1 %v287_v38 }
 0x15f   :  { %894 = vmatprep.subr.bf16.mxu1 %v893_v60 }
 0x162   :  { %896 = vmatpush3.bf16.msra.mxu1 %v893_v60 }
 0x163   :  { %898 = vmatprep.subr.bf16.mxu1 %v897_v63 }
 0x166   :  { %900 = vmatpush3.bf16.msra.mxu1 %v897_v63 }
 0x167   :  { %902 = vmatprep.subr.bf16.mxu1 %v901_v2 }
 0x16a   :  { %904 = vmatpush3.bf16.msra.mxu1 %v901_v2 }
 0x16b   :  { %906 = vmatprep.subr.bf16.mxu1 %v905_v5 }
 0x16e   :  { %908 = vmatpush3.bf16.msra.mxu1 %v905_v5 }
 0x16f   :  { %910 = vmatprep.subr.bf16.mxu1 %v909_v8 }
 0x172   :  { %912 = vmatpush3.bf16.msra.mxu1 %v909_v8 }
 0x173   :  { %914 = vmatprep.subr.bf16.mxu1 %v913_v14 }
 0x176   :  { %916 = vmatpush3.bf16.msra.mxu1 %v913_v14 }
 0x179   :  { %784 = vmatmul.mubr.f32.vlgmr.msra.gmra.mrb[0].mxu1 %v288_v37 }
 0x17a   :  { %786 = vmatprep.mubr.f32.mxu1 %v289_v46 }
 0x17d   :  { %787 = vmatmul.mubr.f32.gmra.mrb[2].mxu1 %v290_v45 }
 0x24c   :  { %v785_v21 = vpop.f32.mrb[0].mxu1 }
 0x24d   :  { %v508_v24 = vadd.f32 %v785_v21, %v556_v11  ;;  %v484_v25 = vpop.f32.mrb[1].mxu1 }
 0x24e   :  { %v507_v26 = vadd.f32 %v556_v11, %v484_v25 }
 0x24f   :  { %v521_v15 = vadd.f32 %v517_v22, %v508_v24 }
 0x250   :  { %v520_v16 = vadd.f32 %v518_v19, %v507_v26  ;;  %v788_v27 = vpop.f32.mrb[2].mxu1 }
 0x251   :  { %v525_v29 = vmax.f32 %v521_v15, 0.0  ;;  %v510_v12 = vadd.f32 %v788_v27, %v556_v11  ;;  %v494_v49 = vpop.f32.mrb[3].mxu1 }
 0x252   :  { %v524_v31 = vmax.f32 %v520_v16, 0.0  ;;  %v509_v32 = vadd.f32 %v556_v11, %v494_v49 }
 0x253   :  { %530 = vst.msk [vmem:[#allocation8 + $0x8] sm:$0xf] %vm529_vm3, %v525_v29  ;;  %v523_v53 = vadd.f32 %v519_v28, %v510_v12 }
 0x254   :  { %528 = vst.msk [vmem:[#allocation8] sm:$0xff] %vm58_vm0, %v524_v31  ;;  %v522_v33 = vadd.f32 %v516_v30, %v509_v32 }
 0x255   :  { %v527_v34 = vmax.f32 %v523_v53, 0.0 }
 0x256   :  { %v526_v35 = vmax.f32 %v522_v33, 0.0 }
 0x257   :  { %532 = vst.msk [vmem:[#allocation8 + $0x18] sm:$0xf] %vm529_vm3, %v527_v34 }
 0x258   :  { %531 = vst.msk [vmem:[#allocation8 + $0x10] sm:$0xff] %vm58_vm0, %v526_v35 }
 0x259   :  { %1008 = shalt.err (!%p1005_p0)
}
 0x25a   :  { %s1009_s27 = scalar_lea.hbm %s1198_s3, 512 }
 0x25b   :  { %p1010_p1 = scmp.ne.s32.totalorder %s1198_s3, %s1009_s27  ;;  %p1013_p2 = scmp.lt.u32.totalorder %s1009_s27, %s1198_s3 }
 0x25d   :  { %p1015_p3 = pnand %p1013_p2, %p1010_p1 }
 0x25f   :  { %1018 = shalt.err (!%p1015_p3)
}
 0x260   :  { %544 = dma.vmem_to_hbm [thread:$0]  %s539_s21, 512, %s1198_s3, [#allocation4], %s1027_s24, %s1027_s24, %s1028_s25  }
 0x261   :  { %1023 = dma.done.wait [#allocation4], 512  }
 0x262   :  { %1024 = vsyncadd [#allocation4], 4294966784 }
 0x263   :  { %548 = vsyncpa [#allocation3], 1 }
 0x264   :  { %549 = vsyncpa [#allocation6], 1 }
 0x265   :  { %550 = vsyncpa [#allocation4], 1 }

</bundles_post_ra>
